<compile_context>
chip_gen: v7x
topology: tpu7x:2x2x1
jax: 0.10.0
libtpu: 0.0.40
codegen_flags: <defaults>
</compile_context>

<pallas_src>
import functools
import math

import numpy as np
import jax
import jax.numpy as jnp
from jax.experimental import pallas as pl
from jax.experimental.pallas import tpu as pltpu


# ----------------------------------------------------------------------------
# Zernike initialization (parameter setup, plain JAX — mirrors torch __init__)
# ----------------------------------------------------------------------------
def zernike_polynomial(n, m, r, theta):
    n_m = n - abs(m)
    if n_m % 2 != 0:
        return jnp.zeros_like(r)
    kmax = n_m // 2
    R = jnp.zeros_like(r)
    for k in range(kmax + 1):
        c = (-1.0) ** k * float(math.factorial(n - k)) / (
            math.factorial(k)
            * math.factorial((n + abs(m)) // 2 - k)
            * math.factorial((n - abs(m)) // 2 - k)
        )
        R = R + c * r ** (n - 2 * k)
    if m >= 0:
        return R * jnp.cos(m * theta)
    else:
        return R * jnp.sin(-m * theta)


def init_phase(grid, zernike_modes, key, coeff_init="random"):
    # grid: (2, H, W). Torch code uses r = sum(grid**2) (i.e. r^2, no sqrt) — keep it.
    r = jnp.sum(grid ** 2, axis=0)
    theta = jnp.arctan2(grid[1], grid[0])
    total_phase = jnp.zeros_like(r)
    keys = jax.random.split(key, len(zernike_modes))
    for i, (n, m) in enumerate(zernike_modes):
        if coeff_init == "random":
            c_ = 0.1 * jax.random.normal(keys[i], (1,), dtype=jnp.float32)
        else:
            c_ = jnp.array([1.0], dtype=jnp.float32)
        Z = zernike_polynomial(n, m, r, theta)
        total_phase = total_phase + c_[0] * Z
    return total_phase.astype(jnp.float32)


# ----------------------------------------------------------------------------
# Pallas kernel: out = field * (cos(phase) + i*sin(phase)), elementwise rotate.
# cos/sin are precomputed (no transcendentals in the hot loop).
# ----------------------------------------------------------------------------
def _phase_rotate_kernel(cos_ref, sin_ref, fr_ref, fi_ref, or_ref, oi_ref):
    c = cos_ref[...]            # (1, TL) — broadcasts over rows (sublanes)
    s = sin_ref[...]
    fr = fr_ref[...]            # (TN, TL)
    fi = fi_ref[...]
    or_ref[...] = fr * c - fi * s
    oi_ref[...] = fr * s + fi * c


_LANE = 128
_SUBLANE = 8


def _round_up(x, m):
    return ((x + m - 1) // m) * m


def _choose_tiles(n_rows, n_cols):
    """Pick (TN, TL): lane-dense (multiple of 128) blocks, ~1 MiB of f32 per tile."""
    target_elems = 1 << 18                              # 256K f32 ≈ 1 MiB
    tl = min(_round_up(n_cols, _LANE), 32 * 1024)       # lane axis
    tn = max(_SUBLANE, ((target_elems // tl) // _SUBLANE) * _SUBLANE)
    tn = min(_round_up(n_rows, _SUBLANE), tn)           # leading axis
    return tn, tl


@functools.partial(jax.jit, static_argnames=("modulo",))
def phase_mask_forward(field, phase, modulo=False):
    """field: complex64 (B, C, H, W); phase: float32 (H, W) -> complex64 (B, C, H, W)."""
    B, C, H, W = field.shape
    N, L = B * C, H * W

    field = field.astype(jnp.complex64)
    # TODO(synk): lax.bitcast_convert_type rejects complex dtypes, so a zero-copy
    # interleaved-pair view is unavailable; the real/imag split stays as XLA ops
    # fused around the custom call (cost estimate attached below).
    fr = jnp.real(field).reshape(N, L)
    fi = jnp.imag(field).reshape(N, L)

    # One-time O(H*W) transcendentals, hoisted out of the per-tile hot loop.
    ph = phase.astype(jnp.float32)
    if modulo:
        # cos/sin are 2*pi-periodic; kept only for exact parity with the
        # torch.remainder(phase, 2*pi) semantics of the reference module.
        ph = jnp.mod(ph, 2.0 * np.pi)
    cos_p = jnp.cos(ph).reshape(1, L)
    sin_p = jnp.sin(ph).reshape(1, L)

    TN, TL = _choose_tiles(N, L)
    grid = (pl.cdiv(L, TL), pl.cdiv(N, TN))             # cols outer, rows inner

    field_spec = pl.BlockSpec((TN, TL), lambda j, i: (i, j))
    mask_spec = pl.BlockSpec((1, TL), lambda j, i: (0, j))   # constant along inner axis

    # 2 inputs + 2 outputs double-buffered field tiles + small mask tiles + slack.
    vmem_bytes = int(2 * 4 * TN * TL * 4 + 2 * 2 * TL * 4 + (2 << 20))

    out_r, out_i = pl.pallas_call(
        _phase_rotate_kernel,
        out_shape=(
            jax.ShapeDtypeStruct((N, L), jnp.float32),
            jax.ShapeDtypeStruct((N, L), jnp.float32),
        ),
        grid_spec=pltpu.PrefetchScalarGridSpec(
            num_scalar_prefetch=0,
            grid=grid,
            in_specs=[mask_spec, mask_spec, field_spec, field_spec],
            out_specs=[field_spec, field_spec],
        ),
        compiler_params=pltpu.CompilerParams(
            dimension_semantics=("parallel", "parallel"),
            vmem_limit_bytes=vmem_bytes,
        ),
        cost_estimate=pl.CostEstimate(
            flops=6 * N * L,
            transcendentals=0,
            bytes_accessed=4 * 4 * N * L + 2 * 4 * L,
        ),
    )(cos_p, sin_p, fr, fi)

    return jax.lax.complex(out_r, out_i).reshape(B, C, H, W)


# ----------------------------------------------------------------------------
# Module-like wrapper
# ----------------------------------------------------------------------------
class PhaseMaskZernikeInitPallas:
    def __init__(self, grid, D=None, zernike_modes=((2, 0), (2, 2)),
                 coeff_init="random", key=None):
        if key is None:
            key = jax.random.PRNGKey(42)
        self.zernike_modes = list(zernike_modes)
        self.phase = init_phase(grid, self.zernike_modes, key, coeff_init)
        self.D = D
        self.r = jnp.sum(grid ** 2, axis=0)
        self.theta = jnp.arctan2(grid[1], grid[0])

    def __call__(self, field, modulo=False):
        # TODO(synk): circular_pupil(field.x_grid, field.y_grid, D) branch not
        # implemented (circular_pupil / field grid attrs not provided); D=None only.
        assert self.D is None
        return phase_mask_forward(field, self.phase, modulo=modulo)


if __name__ == "__main__":
    B, C, H, W = 2, 4, 16, 16

    # Build the (2, H, W) coordinate grid.
    xs = jnp.linspace(-1.0, 1.0, W, dtype=jnp.float32)
    ys = jnp.linspace(-1.0, 1.0, H, dtype=jnp.float32)
    gy, gx = jnp.meshgrid(ys, xs, indexing="ij")
    grid = jnp.stack([gx, gy], axis=0)  # (2, H, W)

    key = jax.random.PRNGKey(0)
    k_field_r, k_field_i, k_coeff = jax.random.split(key, 3)

    field_r = jax.random.normal(k_field_r, (B, C, H, W), dtype=jnp.float32)
    field_i = jax.random.normal(k_field_i, (B, C, H, W), dtype=jnp.float32)
    field = (field_r + 1j * field_i).astype(jnp.complex64)

    module = PhaseMaskZernikeInitPallas(grid, D=None,
                                        zernike_modes=[(2, 0), (2, 2)],
                                        coeff_init="random", key=k_coeff)

    out = module(field, modulo=False)
    out = jax.block_until_ready(out)

    # Reference check (plain JAX) for correctness.
    ref = field * jnp.exp(1j * module.phase)[None, None, :, :].astype(jnp.complex64)
    assert out.shape == (B, C, H, W) and out.dtype == jnp.complex64
    np.testing.assert_allclose(np.asarray(out), np.asarray(ref), rtol=1e-5, atol=1e-5)

    # Also exercise the modulo=True path.
    out_mod = jax.block_until_ready(module(field, modulo=True))
    ref_mod = field * jnp.exp(1j * jnp.mod(module.phase, 2 * np.pi))[None, None].astype(jnp.complex64)
    np.testing.assert_allclose(np.asarray(out_mod), np.asarray(ref_mod), rtol=1e-5, atol=1e-5)

    print("KERNEL_OK")
</pallas_src>

<mosaic_0001>
module attributes {stable_mosaic.version = 11 : i64} {
  func.func @_phase_rotate_kernel(%arg0: i32, %arg1: i32, %arg2: memref<1x256xf32, #tpu.memory_space<vmem>>, %arg3: memref<1x256xf32, #tpu.memory_space<vmem>>, %arg4: memref<8x256xf32, #tpu.memory_space<vmem>>, %arg5: memref<8x256xf32, #tpu.memory_space<vmem>>, %arg6: memref<8x256xf32, #tpu.memory_space<vmem>>, %arg7: memref<8x256xf32, #tpu.memory_space<vmem>>) attributes {dimension_semantics = [#tpu.dimension_semantics<parallel>, #tpu.dimension_semantics<parallel>], iteration_bounds = array<i64: 1, 1>, scalar_prefetch = 0 : i64, scratch_operands = 0 : i64, tpu.core_type = #tpu.core_type<tc>, window_params = [{transform_indices = @transform_0, window_bounds = array<i64: 1, 256>}, {transform_indices = @transform_1, window_bounds = array<i64: 1, 256>}, {transform_indices = @transform_2, window_bounds = array<i64: 8, 256>}, {transform_indices = @transform_3, window_bounds = array<i64: 8, 256>}, {transform_indices = @transform_4, window_bounds = array<i64: 8, 256>}, {transform_indices = @transform_5, window_bounds = array<i64: 8, 256>}]} {
    %c0 = arith.constant 0 : index
    %c0_0 = arith.constant 0 : index
    %0 = vector.load %arg2[%c0, %c0_0] : memref<1x256xf32, #tpu.memory_space<vmem>>, vector<1x256xf32>
    %c0_1 = arith.constant 0 : index
    %c0_2 = arith.constant 0 : index
    %1 = vector.load %arg3[%c0_1, %c0_2] : memref<1x256xf32, #tpu.memory_space<vmem>>, vector<1x256xf32>
    %c0_3 = arith.constant 0 : index
    %c0_4 = arith.constant 0 : index
    %2 = vector.load %arg4[%c0_3, %c0_4] : memref<8x256xf32, #tpu.memory_space<vmem>>, vector<8x256xf32>
    %c0_5 = arith.constant 0 : index
    %c0_6 = arith.constant 0 : index
    %3 = vector.load %arg5[%c0_5, %c0_6] : memref<8x256xf32, #tpu.memory_space<vmem>>, vector<8x256xf32>
    %4 = vector.broadcast %0 : vector<1x256xf32> to vector<8x256xf32>
    %5 = arith.mulf %2, %4 : vector<8x256xf32>
    %6 = vector.broadcast %1 : vector<1x256xf32> to vector<8x256xf32>
    %7 = arith.mulf %3, %6 : vector<8x256xf32>
    %8 = arith.subf %5, %7 : vector<8x256xf32>
    %c0_7 = arith.constant 0 : index
    %c0_8 = arith.constant 0 : index
    %9 = vector.load %arg6[%c0_7, %c0_8] : memref<8x256xf32, #tpu.memory_space<vmem>>, vector<8x256xf32>
    tpu.vector_store %arg6[%c0_7, %c0_8], %8 {strides = array<i32>} : memref<8x256xf32, #tpu.memory_space<vmem>>, vector<8x256xf32>,
    %10 = vector.broadcast %1 : vector<1x256xf32> to vector<8x256xf32>
    %11 = arith.mulf %2, %10 : vector<8x256xf32>
    %12 = vector.broadcast %0 : vector<1x256xf32> to vector<8x256xf32>
    %13 = arith.mulf %3, %12 : vector<8x256xf32>
    %14 = arith.addf %11, %13 : vector<8x256xf32>
    %c0_9 = arith.constant 0 : index
    %c0_10 = arith.constant 0 : index
    %15 = vector.load %arg7[%c0_9, %c0_10] : memref<8x256xf32, #tpu.memory_space<vmem>>, vector<8x256xf32>
    tpu.vector_store %arg7[%c0_9, %c0_10], %14 {strides = array<i32>} : memref<8x256xf32, #tpu.memory_space<vmem>>, vector<8x256xf32>,
    return
  }
  func.func @transform_0(%arg0: i32, %arg1: i32) -> (i32, i32) {
    %c0_i32 = arith.constant 0 : i32
    %c0_i32_0 = arith.constant 0 : i32
    return %c0_i32, %arg0 : i32, i32
  }
  func.func @transform_1(%arg0: i32, %arg1: i32) -> (i32, i32) {
    %c0_i32 = arith.constant 0 : i32
    %c0_i32_0 = arith.constant 0 : i32
    return %c0_i32, %arg0 : i32, i32
  }
  func.func @transform_2(%arg0: i32, %arg1: i32) -> (i32, i32) {
    %c0_i32 = arith.constant 0 : i32
    return %arg1, %arg0 : i32, i32
  }
  func.func @transform_3(%arg0: i32, %arg1: i32) -> (i32, i32) {
    %c0_i32 = arith.constant 0 : i32
    return %arg1, %arg0 : i32, i32
  }
  func.func @transform_4(%arg0: i32, %arg1: i32) -> (i32, i32) {
    %c0_i32 = arith.constant 0 : i32
    return %arg1, %arg0 : i32, i32
  }
  func.func @transform_5(%arg0: i32, %arg1: i32) -> (i32, i32) {
    %c0_i32 = arith.constant 0 : i32
    return %arg1, %arg0 : i32, i32
  }
}

</mosaic_0001>

<bundles_post_ra>
// kernel: custom-call.1
= control target key start
LH: loop header
LB: loop body
LE: loop exit
PB: predicated region body
PF: predicated region fallthrough
CT: control target
= control target key end

     0   :  { %s59_s0 = inlined_call_operand.hbm [shape: c64[2,4,16,16], index: 0, kind: input, shape index: {}]   ;;  %s60_s1 = inlined_call_operand.vmem [shape: f32[2,4,16,16], index: 1, kind: output, shape index: {}]  }
   0x1   :  { %s2_s8 = scalar_lea.hbm %s59_s0, 2048 }
   0x2   :  { %3 = vsyncpa [#allocation0], 0  ;;  %s4_s11 = sshll.u32 %s60_s1, 4  ;;  %s34_s14 = scalar_lea.hbm %s59_s0, 4096  ;;  %s5_s11 = int_to_ptr.vmem [resolvable:$true] %s4_s11 }
   0x3   :  { %p11_p0 = scmp.ne.s32.totalorder %s2_s8, %s34_s14  ;;  %p13_p1 = scmp.lt.u32.totalorder %s2_s8, %s59_s0 }
   0x4   :  { %p14_p2 = scmp.lt.u32.totalorder %s34_s14, %s34_s14  ;;  %p16_p4 = scmp.lt.u32.totalorder %s34_s14, %s2_s8 }
   0x6   :  { %p15_p3 = por %p14_p2, %p13_p1 }
   0x8   :  { %p17_p5 = por %p16_p4, %p15_p3 }
   0xa   :  { %p18_p6 = pnand %p17_p5, %p11_p0 }
   0xc   :  { %21 = shalt.err (!%p18_p6)  }
   0xd   :  { %s22_s17 = scalar_lea.vmem %s5_s11, 2048  ;;  %p27_p8 = scmp.lt.s32.totalorder %s5_s11, %s5_s11 }
   0xe   :  { %p23_p7 = scmp.ne.s32.totalorder %s5_s11, %s22_s17  ;;  %p28_p9 = scmp.lt.s32.totalorder %s22_s17, %s22_s17 }
  0x10   :  { %p29_p10 = por %p28_p9, %p27_p8 }
  0x12   :  { %p30_p11 = pnand %p29_p10, %p23_p7 }
  0x14   :  { %33 = shalt.err (!%p30_p11)  }
  0x15   :  { %7 = dma.hbm_to_vmem [thread:$0]  %s2_s8, 2048, %s5_s11, [#allocation0] }
  0x16   :  { %35 = dma.done.wait [#allocation0], 2048  }
  0x17   :  { %36 = vsyncadd [#allocation0], 4294965248 }
  0x18   :  { %9 = vsyncpa [#allocation0], 1 }

// kernel: custom-call
= control target key start
LH: loop header
LB: loop body
LE: loop exit
PB: predicated region body
PF: predicated region fallthrough
CT: control target
= control target key end

     0   :  { %2 = vsyncpa [#allocation0], 0  ;;  %s61_s0 = inlined_call_operand.hbm [shape: c64[2,4,16,16], index: 0, kind: input, shape index: {}]   ;;  %s62_s1 = inlined_call_operand.vmem [shape: f32[2,4,16,16], index: 1, kind: output, shape index: {}]  }
   0x1   :  { %s3_s8 = sshll.u32 %s62_s1, 4  ;;  %s9_s11 = scalar_lea.hbm %s61_s0, 2048  ;;  %s4_s8 = int_to_ptr.vmem [resolvable:$true] %s3_s8 }
   0x2   :  { %p10_p0 = scmp.ne.s32.totalorder %s61_s0, %s9_s11  ;;  %s11_s16 = scalar_lea.hbm %s61_s0, 4096 }
   0x3   :  { %p12_p1 = scmp.lt.u32.totalorder %s11_s16, %s9_s11  ;;  %p13_p2 = scmp.lt.u32.totalorder %s9_s11, %s61_s0 }
   0x5   :  { %p14_p3 = por %p13_p2, %p12_p1 }
   0x7   :  { %p15_p4 = pnand %p14_p3, %p10_p0 }
   0x9   :  { %18 = shalt.err (!%p15_p4)  }
   0xa   :  { %s19_s1 = scalar_lea.vmem %s4_s8, 2048  ;;  %p24_p6 = scmp.lt.s32.totalorder %s4_s8, %s4_s8 }
   0xb   :  { %p20_p5 = scmp.ne.s32.totalorder %s4_s8, %s19_s1  ;;  %p25_p7 = scmp.lt.s32.totalorder %s19_s1, %s19_s1 }
   0xd   :  { %p26_p8 = por %p25_p7, %p24_p6 }
   0xf   :  { %p27_p9 = pnand %p26_p8, %p20_p5 }
  0x11   :  { %30 = shalt.err (!%p27_p9)  }
  0x12   :  { %6 = dma.hbm_to_vmem [thread:$0]  %s61_s0, 2048, %s4_s8, [#allocation0] }
  0x13   :  { %31 = dma.done.wait [#allocation0], 2048  }
  0x14   :  { %32 = vsyncadd [#allocation0], 4294965248 }
  0x15   :  { %8 = vsyncpa [#allocation0], 1 }

// kernel: custom-call.2
= control target key start
LH: loop header
LB: loop body
LE: loop exit
PB: predicated region body
PF: predicated region fallthrough
CT: control target
= control target key end

     0   :  { %s126_s0 = inlined_call_operand.vmem [shape: f32[2,4,16,16], index: 0, kind: input, shape index: {}]   ;;  %s127_s1 = inlined_call_operand.vmem [shape: f32[2,4,16,16], index: 1, kind: input, shape index: {}]   ;;  %s128_s2 = inlined_call_operand.hbm [shape: c64[2,4,16,16], index: 2, kind: output, shape index: {}]  }
   0x1   :  { %s87_s11 = scalar_lea.hbm %s128_s2, 2048 }
   0x2   :  { %4 = vsyncpa [#allocation0], 0  ;;  %s5_s14 = sshll.u32 %s126_s0, 4  ;;  %s6_s14 = int_to_ptr.vmem [resolvable:$true] %s5_s14 }
   0x3   :  { %s18_s15 = scalar_lea.vmem %s6_s14, 2048  ;;  %p23_p1 = scmp.lt.s32.totalorder %s6_s14, %s6_s14 }
   0x4   :  { %p19_p0 = scmp.ne.s32.totalorder %s6_s14, %s18_s15  ;;  %p24_p2 = scmp.lt.s32.totalorder %s18_s15, %s18_s15 }
   0x6   :  { %p25_p3 = por %p24_p2, %p23_p1 }
   0x8   :  { %p26_p4 = pnand %p25_p3, %p19_p0 }
   0xa   :  { %29 = shalt.err (!%p26_p4)  }
   0xb   :  { %p31_p5 = scmp.ne.s32.totalorder %s128_s2, %s87_s11  ;;  %s32_s0 = scalar_lea.hbm %s128_s2, 4096 }
   0xc   :  { %p33_p6 = scmp.lt.u32.totalorder %s32_s0, %s87_s11  ;;  %p34_p7 = scmp.lt.u32.totalorder %s87_s11, %s128_s2 }
   0xe   :  { %p35_p8 = por %p34_p7, %p33_p6 }
  0x10   :  { %p36_p9 = pnand %p35_p8, %p31_p5 }
  0x12   :  { %39 = shalt.err (!%p36_p9)  }
  0x13   :  { %8 = dma.vmem_to_hbm [thread:$0]  %s6_s14, 2048, %s128_s2, [#allocation0] }
  0x14   :  { %65 = dma.done.wait [#allocation0], 2048  }
  0x15   :  { %66 = vsyncadd [#allocation0], 4294965248 }
  0x16   :  { %10 = vsyncpa [#allocation0], 1 }
  0x17   :  { %11 = vsyncpa [#allocation1], 0  ;;  %s12_s28 = sshll.u32 %s127_s1, 4  ;;  %s13_s28 = int_to_ptr.vmem [resolvable:$true] %s12_s28 }
  0x18   :  { %s40_s29 = scalar_lea.vmem %s13_s28, 2048  ;;  %p45_p11 = scmp.lt.s32.totalorder %s13_s28, %s13_s28 }
  0x19   :  { %p41_p10 = scmp.ne.s32.totalorder %s13_s28, %s40_s29  ;;  %p46_p12 = scmp.lt.s32.totalorder %s40_s29, %s40_s29 }
  0x1b   :  { %p47_p13 = por %p46_p12, %p45_p11 }
  0x1d   :  { %p48_p0 = pnand %p47_p13, %p41_p10 }
  0x1f   :  { %51 = shalt.err (!%p48_p0)  }
  0x20   :  { %p53_p1 = scmp.ne.s32.totalorder %s87_s11, %s32_s0  ;;  %p56_p2 = scmp.lt.u32.totalorder %s32_s0, %s32_s0 }
  0x22   :  { %p57_p3 = por %p56_p2, %p34_p7 }
  0x24   :  { %p59_p4 = por %p57_p3, %p33_p6 }
  0x26   :  { %p60_p5 = pnand %p59_p4, %p53_p1 }
  0x28   :  { %63 = shalt.err (!%p60_p5)  }
  0x29   :  { %15 = dma.vmem_to_hbm [thread:$0]  %s13_s28, 2048, %s87_s11, [#allocation1] }
  0x2a   :  { %67 = dma.done.wait [#allocation1], 2048  }
  0x2b   :  { %68 = vsyncadd [#allocation1], 4294965248 }
  0x2c   :  { %17 = vsyncpa [#allocation1], 1 }

// kernel: phase_mask_forward.1
= control target key start
LH: loop header
LB: loop body
LE: loop exit
PB: predicated region body
PF: predicated region fallthrough
CT: control target
= control target key end

     0   :  { %v26_v0 = vlaneseq  ;;  %s131_s0 = inlined_call_operand.vmem [shape: f32[1,256], index: 0, kind: input, shape index: {}]   ;;  %s132_s1 = inlined_call_operand.vmem [shape: f32[1,256], index: 1, kind: input, shape index: {}]   ;;  %s133_s2 = inlined_call_operand.vmem [shape: f32[8,256], index: 2, kind: input, shape index: {}]   ;;  %s134_s3 = inlined_call_operand.vmem [shape: f32[8,256], index: 3, kind: input, shape index: {}]   ;;  %s135_s4 = inlined_call_operand.vmem [shape: f32[8,256], index: 4, kind: output, shape index: {0}]   ;;  %s136_s5 = inlined_call_operand.vmem [shape: f32[8,256], index: 5, kind: output, shape index: {1}]  }
   0x1   :  { %v19_v2 = vld [vmem:[%s131_s0] sm:$0x3]  ;;  %v22_v8 = vld [vmem:[%s133_s2 + $0x8] sm:$0xff] }
   0x2   :  { %v27_v1 = vshrl.u32 %v26_v0, 7  ;;  %v20_v3 = vld [vmem:[%s132_s1] sm:$0x3]  ;;  %v24_v9 = vld [vmem:[%s134_s3 + $0x8] sm:$0xff] }
   0x3   :  { %v21_v4 = vld [vmem:[%s133_s2] sm:$0xff] }
   0x4   :  { %v28_v5 = vsub.s32 0, %v27_v1  ;;  %v32_v6 = vsub.s32 1, %v27_v1  ;;  %v23_v7 = vld [vmem:[%s134_s3] sm:$0xff] }
   0x6   :  { %v29_v10 = vrot.slane %v19_v2, %v28_v5  ;;  %v42_v11 = vrot.slane %v20_v3, %v28_v5  ;;  %v33_v12 = vrot.slane %v19_v2, %v32_v6  ;;  %v46_v13 = vrot.slane %v20_v3, %v32_v6 }
   0x8   :  { %v36_v14 = vmul.f32 %v29_v10, %v21_v4  ;;  %v49_v15 = vmul.f32 %v42_v11, %v23_v7  ;;  %v37_v16 = vmul.f32 %v33_v12, %v22_v8  ;;  %v50_v17 = vmul.f32 %v46_v13, %v24_v9 }
   0x9   :  { %v55_v18 = vmul.f32 %v42_v11, %v21_v4  ;;  %v57_v19 = vmul.f32 %v29_v10, %v23_v7  ;;  %v56_v20 = vmul.f32 %v46_v13, %v22_v8  ;;  %v58_v21 = vmul.f32 %v33_v12, %v24_v9 }
   0xa   :  { %v51_v22 = vsub.f32 %v36_v14, %v49_v15  ;;  %v52_v23 = vsub.f32 %v37_v16, %v50_v17 }
   0xb   :  { %v59_v24 = vadd.f32 %v57_v19, %v55_v18  ;;  %v60_v25 = vadd.f32 %v58_v21, %v56_v20 }
   0xc   :  { %53 = vst [vmem:[%s135_s4] sm:$0xff] %v51_v22  ;;  %54 = vst [vmem:[%s135_s4 + $0x8] sm:$0xff] %v52_v23 }
   0xd   :  { %61 = vst [vmem:[%s136_s5] sm:$0xff] %v59_v24  ;;  %62 = vst [vmem:[%s136_s5 + $0x8] sm:$0xff] %v60_v25 }

</bundles_post_ra>
